<compile_context>
chip_gen: v6e
topology: v6e:2x2x1
jax: 0.10.0
libtpu: 0.0.40
codegen_flags: <defaults>
</compile_context>

<pallas_src>
import jax
import jax.numpy as jnp
from jax import lax
from jax.experimental import pallas as pl
from jax.experimental.pallas import tpu as pltpu


def linear_kernel(x_ref, w_ref, b_ref, o_ref, acc_ref):
    # x_ref: (B, TK) bf16   w_ref: (N, TK) bf16   b_ref: (1, N) f32
    # o_ref: (B, N)  f32    acc_ref: (B, N) f32 scratch
    k = pl.program_id(0)

    @pl.when(k == 0)
    def _():
        acc_ref[...] = jnp.zeros_like(acc_ref)

    # Contract over the shared last (K) dim: x @ W.T, f32 accumulation on MXU.
    acc_ref[...] += lax.dot_general(
        x_ref[...],
        w_ref[...],
        dimension_numbers=(((1,), (1,)), ((), ())),
        preferred_element_type=jnp.float32,
    )

    @pl.when(k == pl.num_programs(0) - 1)
    def _():
        o_ref[...] = (acc_ref[...] + b_ref[...]).astype(o_ref.dtype)


def cafenet_forward(x, weight, bias, *, tk=11520):
    """x: (B, K) f32, weight: (N, K) f32 (native PyTorch layout), bias: (N,).

    Returns (B, N) f32 == x @ weight.T + bias (bf16 inputs, f32 accumulation).
    """
    B, K = x.shape
    N, Kw = weight.shape
    assert K == Kw and bias.shape == (N,)
    assert tk % 128 == 0, "contraction tile must be 128-aligned"

    # Zero-pad K up to a multiple of the tile (91200 % 128 == 64, so a ragged
    # tail would otherwise feed undefined lanes into the accumulator).
    nk = pl.cdiv(K, tk)
    k_pad = nk * tk
    pad = k_pad - K
    x_p = jnp.pad(x, ((0, 0), (0, pad))).astype(jnp.bfloat16)
    w_p = jnp.pad(weight, ((0, 0), (0, pad))).astype(jnp.bfloat16)
    b_row = bias.reshape(1, N).astype(jnp.float32)

    # Advisory cost estimate (bytes use the sublane-padded tiled footprint).
    cost = pl.CostEstimate(
        flops=2 * B * K * N,
        transcendentals=0,
        bytes_accessed=(8 * k_pad * 2) + (8 * k_pad * 2) + (B * N * 4) + (N * 4),
    )

    return pl.pallas_call(
        linear_kernel,
        out_shape=jax.ShapeDtypeStruct((B, N), jnp.float32),
        grid_spec=pltpu.PrefetchScalarGridSpec(
            num_scalar_prefetch=0,
            grid=(nk,),
            in_specs=[
                pl.BlockSpec((B, tk), lambda k: (0, k)),   # x chunk
                pl.BlockSpec((N, tk), lambda k: (0, k)),   # weight chunk (native layout)
                pl.BlockSpec((1, N), lambda k: (0, 0)),    # bias (tiny, resident)
            ],
            out_specs=pl.BlockSpec((B, N), lambda k: (0, 0)),
            scratch_shapes=[pltpu.VMEM((B, N), jnp.float32)],
        ),
        compiler_params=pltpu.CompilerParams(
            dimension_semantics=("arbitrary",),  # K is a reduction axis
        ),
        cost_estimate=cost,
    )(x_p, w_p, b_row)


def init_params(key, in_features=91200, out_features=6):
    # Deterministic init mimicking nn.Linear default: U(-1/sqrt(in), 1/sqrt(in)).
    k_w, k_b = jax.random.split(key)
    bound = 1.0 / jnp.sqrt(jnp.float32(in_features))
    weight = jax.random.uniform(
        k_w, (out_features, in_features), jnp.float32, -bound, bound
    )
    bias = jax.random.uniform(k_b, (out_features,), jnp.float32, -bound, bound)
    return weight, bias


if __name__ == "__main__":
    IN_FEATURES = 91200   # fixed by the module's __init__
    CLASSES = 6
    BATCH = 2

    key = jax.random.PRNGKey(0)
    k_x, k_p = jax.random.split(key)

    x = jax.random.normal(k_x, (BATCH, IN_FEATURES), dtype=jnp.float32)
    weight, bias = init_params(k_p, IN_FEATURES, CLASSES)

    out = cafenet_forward(x, weight, bias)
    out = jax.block_until_ready(out)
    assert out.shape == (BATCH, CLASSES)

    # Reference 1: same bf16-input / f32-accumulate semantics as the kernel.
    x_bf = x.astype(jnp.bfloat16).astype(jnp.float32)
    w_bf = weight.astype(jnp.bfloat16).astype(jnp.float32)
    ref_bf16 = x_bf @ w_bf.T + bias
    assert jnp.allclose(out, ref_bf16, atol=1e-2, rtol=1e-2), "mismatch vs bf16 reference"

    # Reference 2: full-f32 PyTorch semantics (looser tolerance for bf16 inputs).
    ref_f32 = x @ weight.T + bias
    assert jnp.allclose(out, ref_f32, atol=5e-2, rtol=5e-2), "mismatch vs f32 reference"

    print("KERNEL_OK")
</pallas_src>

<mosaic_0001>
module attributes {stable_mosaic.version = 11 : i64} {
  func.func @linear_kernel(%arg0: i32, %arg1: memref<2x11520xbf16, #tpu.memory_space<vmem>>, %arg2: memref<6x11520xbf16, #tpu.memory_space<vmem>>, %arg3: memref<1x6xf32, #tpu.memory_space<vmem>>, %arg4: memref<2x6xf32, #tpu.memory_space<vmem>>, %arg5: memref<2x6xf32, #tpu.memory_space<vmem>>) attributes {dimension_semantics = [#tpu.dimension_semantics<arbitrary>], iteration_bounds = array<i64: 8>, scalar_prefetch = 0 : i64, scratch_operands = 1 : i64, tpu.core_type = #tpu.core_type<tc>, window_params = [{transform_indices = @transform_0, window_bounds = array<i64: 2, 11520>}, {transform_indices = @transform_1, window_bounds = array<i64: 6, 11520>}, {pipeline_mode = #tpu.pipeline_mode<synchronous>, transform_indices = @transform_2, window_bounds = array<i64: 1, 6>}, {pipeline_mode = #tpu.pipeline_mode<synchronous>, transform_indices = @transform_3, window_bounds = array<i64: 2, 6>}]} {
    %c0_i32 = arith.constant 0 : i32
    %0 = arith.cmpi eq, %arg0, %c0_i32 : i32
    %1 = arith.extui %0 : i1 to i32
    %c0_i32_0 = arith.constant 0 : i32
    %2 = arith.cmpi ne, %1, %c0_i32_0 : i32
    scf.if %2 {
      %cst_9 = arith.constant 0.000000e+00 : f32
      %12 = vector.broadcast %cst_9 : f32 to vector<2x6xf32>
      %c0_10 = arith.constant 0 : index
      %c0_11 = arith.constant 0 : index
      %13 = vector.load %arg5[%c0_10, %c0_11] : memref<2x6xf32, #tpu.memory_space<vmem>>, vector<2x6xf32>
      tpu.vector_store %arg5[%c0_10, %c0_11], %12 {strides = array<i32>} : memref<2x6xf32, #tpu.memory_space<vmem>>, vector<2x6xf32>,
    } else {
    }
    %c0 = arith.constant 0 : index
    %c0_1 = arith.constant 0 : index
    %3 = vector.load %arg5[%c0, %c0_1] : memref<2x6xf32, #tpu.memory_space<vmem>>, vector<2x6xf32>
    %c0_2 = arith.constant 0 : index
    %c0_3 = arith.constant 0 : index
    %4 = vector.load %arg1[%c0_2, %c0_3] : memref<2x11520xbf16, #tpu.memory_space<vmem>>, vector<2x11520xbf16>
    %c0_4 = arith.constant 0 : index
    %c0_5 = arith.constant 0 : index
    %5 = vector.load %arg2[%c0_4, %c0_5] : memref<6x11520xbf16, #tpu.memory_space<vmem>>, vector<6x11520xbf16>
    %cst = arith.constant dense<0.000000e+00> : vector<2x6xf32>
    %6 = tpu.matmul %4, %5, %cst {dimension_numbers = #tpu.dot_dimension_numbers<[1], [1], [0], [0], [0, 0, 1, 0], [], []>} : vector<2x11520xbf16>, vector<6x11520xbf16>, vector<2x6xf32> -> vector<2x6xf32>
    %7 = arith.addf %3, %6 : vector<2x6xf32>
    %c0_6 = arith.constant 0 : index
    %c0_7 = arith.constant 0 : index
    %8 = vector.load %arg5[%c0_6, %c0_7] : memref<2x6xf32, #tpu.memory_space<vmem>>, vector<2x6xf32>
    tpu.vector_store %arg5[%c0_6, %c0_7], %7 {strides = array<i32>} : memref<2x6xf32, #tpu.memory_space<vmem>>, vector<2x6xf32>,
    %c7_i32 = arith.constant 7 : i32
    %9 = arith.cmpi eq, %arg0, %c7_i32 : i32
    %10 = arith.extui %9 : i1 to i32
    %c0_i32_8 = arith.constant 0 : i32
    %11 = arith.cmpi ne, %10, %c0_i32_8 : i32
    scf.if %11 {
      %c0_9 = arith.constant 0 : index
      %c0_10 = arith.constant 0 : index
      %12 = vector.load %arg5[%c0_9, %c0_10] : memref<2x6xf32, #tpu.memory_space<vmem>>, vector<2x6xf32>
      %c0_11 = arith.constant 0 : index
      %c0_12 = arith.constant 0 : index
      %13 = vector.load %arg3[%c0_11, %c0_12] : memref<1x6xf32, #tpu.memory_space<vmem>>, vector<1x6xf32>
      %14 = vector.broadcast %13 : vector<1x6xf32> to vector<2x6xf32>
      %15 = arith.addf %12, %14 : vector<2x6xf32>
      %c0_13 = arith.constant 0 : index
      %c0_14 = arith.constant 0 : index
      %16 = vector.load %arg4[%c0_13, %c0_14] : memref<2x6xf32, #tpu.memory_space<vmem>>, vector<2x6xf32>
      tpu.vector_store %arg4[%c0_13, %c0_14], %15 {strides = array<i32>} : memref<2x6xf32, #tpu.memory_space<vmem>>, vector<2x6xf32>,
    } else {
    }
    return
  }
  func.func @transform_0(%arg0: i32) -> (i32, i32) {
    %c0_i32 = arith.constant 0 : i32
    %c0_i32_0 = arith.constant 0 : i32
    return %c0_i32, %arg0 : i32, i32
  }
  func.func @transform_1(%arg0: i32) -> (i32, i32) {
    %c0_i32 = arith.constant 0 : i32
    %c0_i32_0 = arith.constant 0 : i32
    return %c0_i32, %arg0 : i32, i32
  }
  func.func @transform_2(%arg0: i32) -> (i32, i32) {
    %c0_i32 = arith.constant 0 : i32
    %c0_i32_0 = arith.constant 0 : i32
    %c0_i32_1 = arith.constant 0 : i32
    return %c0_i32, %c0_i32_0 : i32, i32
  }
  func.func @transform_3(%arg0: i32) -> (i32, i32) {
    %c0_i32 = arith.constant 0 : i32
    %c0_i32_0 = arith.constant 0 : i32
    %c0_i32_1 = arith.constant 0 : i32
    return %c0_i32, %c0_i32_0 : i32, i32
  }
}

</mosaic_0001>

<bundles_post_ra>
// kernel: tpu_custom_call.1
= control target key start
LH: loop header
LB: loop body
LE: loop exit
PB: predicated region body
PF: predicated region fallthrough
CT: control target
= control target key end

     0   :  { %8 = vsyncpa [#allocation4], 0  ;;  %s3938_s0 = inlined_call_operand.hbm [shape: bf16[2,92160], index: 0, kind: input, shape index: {}]   ;;  %s3939_s1 = inlined_call_operand.hbm [shape: bf16[6,92160], index: 1, kind: input, shape index: {}]   ;;  %s3940_s2 = inlined_call_operand.hbm [shape: f32[1,6], index: 2, kind: input, shape index: {}]   ;;  %s3941_s3 = inlined_call_operand.hbm [shape: f32[2,6], index: 3, kind: output, shape index: {}]  }
   0x1   :  { %10 = vsyncpa [#allocation4 + $0x1], 0 }
   0x2   :  { %11 = vsyncpa [#allocation7], 0 }
   0x3   :  { %13 = vsyncpa [#allocation7 + $0x1], 0 }
   0x4   :  { %14 = vsyncpa [#allocation5], 0  ;;  %s3633_s12 = smov 0   ;;  %s3635_s13 = smov 0  }
   0x5   :  { %s3637_s14 = smov 0   ;;  %s3639_s15 = smov 0  }
   0x6 LB: > { %s3652_s16 = sadd.s32 4294967295, %s3605_s15   ;;  %s3655_s17 = sadd.s32 1, %s3605_s15   ;;  %s3605_s15 = sphi %s3639_s15, %s3957_s15   ;;  %s3601_s14 = sphi %s3637_s14, %s3956_s14   ;;  %s3597_s13 = sphi %s3635_s13, %s3955_s13   ;;  %s3593_s12 = sphi %s3633_s12, %s3954_s12  }
   0x7   : > { %s24_s18 = ssub.s32 %s3605_s15, %s3655_s17  ;;  %s27_s19 = sadd.s32 1, %s3601_s14 }
   0x8   : > { %p25_p0 = scmp.eq.s32.totalorder %s24_s18, 0  ;;  %p34_p1 = scmp.ne.s32.totalorder %s3601_s14, %s3597_s13 }
   0x9   : > { %p40_p2 = scmp.ne.s32.totalorder %s3597_s13, %s3593_s12  ;;  %p3942_p3 = scmp.eq.s32.totalorder %s3652_s16, 0 }
   0xa   : > { %s3665_s20 = scalar_select %p25_p0, %s3601_s14, %s27_s19  }
   0xb   : > { %p3669_p4 = por %p3942_p3, %p40_p2  ;;  %p3177_p5 = scmp.ge.s32.totalorder %s3605_s15, 1 }
   0xc   : > { %p119_p6 = scmp.lt.s32.totalorder %s3605_s15, 9  ;;  %s3607_s23 = smov [#allocation8]  }
   0xd   : > { %s3945_s21 = scalar_select %p3669_p4, 1, 0 }
   0xe   : > { %p3676_p8 = pnand %p3177_p5, %p119_p6  ;;  %s132_s24 = sshll.u32 %s3607_s23, 4  ;;  %s133_s24 = int_to_ptr.vmem [resolvable:$true] %s132_s24 }
   0xf   : > { %p35_p9 = scmp.eq.s32.totalorder %s3605_s15, 0  ;;  %p3312_p11 = scmp.lt.s32.totalorder %s3605_s15, 8 }
  0x10   : > { %s3946_s22 = scalar_select %p3676_p8, 1, 0 }
  0x11   : > { %p3300_p10 = pneg %p3676_p8  ;;  %p36_p12 = por %p35_p9, %p34_p1 }
  0x12   : > { %s3688_s25 = sand.u32 1, %s3601_s14   ;;  %s3282_s29 = smul.u32 1440, %s3605_s15 }
  0x13   : > { %p3692_p13 = pnand %p3300_p10, %p3942_p3  ;;  %s3284_s27 = smul.u32 90, %s3688_s25 }
  0x14   : > { %p3697_p0 = pnand %p3312_p11, %p36_p12  ;;  %s3464_s30 = scalar_lea.vmem %s133_s24, 16 }
  0x15   : > { %p3455_p2 = pneg %p3692_p13  ;;  %p3465_p5 = scmp.ne.s32.totalorder %s133_s24, %s3464_s30 }
  0x16   : > { %s3471_s4 = scalar_lea.vmem %s133_s24, 32  ;;  %p3472_p9 = scmp.lt.s32.totalorder %s133_s24, %s133_s24 }
  0x17   : > { %p3467_p1 = pnand %p3465_p5, %p3455_p2  ;;  %p3473_p7 = scmp.lt.s32.totalorder %s3471_s4, %s3464_s30 }
  0x19   : > { %p3468_p6 = pneg %p3467_p1  ;;  %p3474_p10 = por %p3473_p7, %p3472_p9 }
  0x1b   : > { %p3475_p3 = pnand %p3474_p10, %p3468_p6 }
  0x1d   : > { %3478 = shalt.err (!%p3475_p3)
}
  0x1e   : > { %3303 = dma.hbm_to_vmem [thread:$0]  (!%p3692_p13), %s3940_s2, 16, %s133_s24, [#allocation7]  }
  0x1f   : > { %s3712_s9 = scalar_lea.hbm %s3938_s0, %s3282_s29  ;;  %s147_s10 = scalar_lea.vmem [#allocation3], %s3284_s27 }
  0x20   : > { %s155_s11 = sshll.u32 %s147_s10, 4  ;;  %s162_s12 = sand.u32 1, %s3605_s15   ;;  %s156_s11 = int_to_ptr.vmem [resolvable:$true] %s155_s11 }
  0x21   : > { %s144_s18 = scalar_lea.sflag [#allocation4], %s3688_s25  ;;  %s3479_s19 = scalar_lea.hbm %s3712_s9, 1440 }
  0x22   : > { %p3480_p3 = scmp.ne.s32.totalorder %s3712_s9, %s3479_s19  ;;  %p3481_p7 = pneg %p3697_p0 }
  0x23   : > { %s3484_s26 = scalar_lea.hbm %s3938_s0, 11520  ;;  %p3485_p13 = scmp.lt.s32.totalorder %s3712_s9, %s3938_s0 }
  0x24   : > { %p3482_p11 = pnand %p3481_p7, %p3480_p3  ;;  %p3486_p2 = scmp.lt.s32.totalorder %s3484_s26, %s3479_s19 }
  0x26   : > { %p3483_p12 = pneg %p3482_p11  ;;  %p3487_p5 = por %p3486_p2, %p3485_p13 }
  0x28   : > { %p3488_p1 = pnand %p3487_p5, %p3483_p12 }
  0x2a   : > { %3491 = shalt.err (!%p3488_p1)
}
  0x2b   : > { %s3492_s27 = scalar_lea.vmem %s156_s11, 1440  ;;  %s3608_s4 = smov [#allocation3]  }
  0x2c   : > { %p3493_p6 = scmp.ne.s32.totalorder %s156_s11, %s3492_s27  ;;  %s3497_s5 = sshll.u32 %s3608_s4, 4  ;;  %s3498_s5 = int_to_ptr.vmem [resolvable:$false] %s3497_s5 }
  0x2d   : > { %s3499_s6 = scalar_lea.vmem %s3498_s5, 2880  ;;  %p3500_p3 = scmp.lt.s32.totalorder %s156_s11, %s3498_s5 }
  0x2e   : > { %p3495_p9 = pnand %p3493_p6, %p3481_p7  ;;  %p3501_p11 = scmp.lt.s32.totalorder %s3499_s6, %s3492_s27 }
  0x30   : > { %p3496_p10 = pneg %p3495_p9  ;;  %p3502_p4 = por %p3501_p11, %p3500_p3 }
  0x32   : > { %p3503_p8 = pnand %p3502_p4, %p3496_p10 }
  0x34   : > { %3506 = shalt.err (!%p3503_p8)
}
  0x35   : > { %3307 = dma.hbm_to_vmem [thread:$0]  (!%p3697_p0), %s3712_s9, 1440, %s156_s11, %s144_s18  }
  0x36   : > { %s3285_s7 = smul.u32 360, %s3688_s25  ;;  %s163_s29 = scalar_lea.sflag [#allocation7], %s162_s12 }
  0x37   : > { %s3283_s8 = smul.u32 5760, %s3605_s15  ;;  %s3512_s11 = scalar_lea.hbm %s3939_s1, 46080 }
  0x38   : > { %s166_s24 = scalar_lea.vmem [#allocation6], %s3285_s7 }
  0x39   : > { %s3741_s23 = scalar_lea.hbm %s3939_s1, %s3283_s8  ;;  %s174_s26 = sshll.u32 %s166_s24, 4  ;;  %s175_s26 = int_to_ptr.vmem [resolvable:$true] %s174_s26 }
  0x3a   : > { %s3507_s30 = scalar_lea.hbm %s3741_s23, 5760  ;;  %p3513_p13 = scmp.lt.s32.totalorder %s3741_s23, %s3939_s1 }
  0x3b   : > { %p3508_p4 = scmp.ne.s32.totalorder %s3741_s23, %s3507_s30  ;;  %p3514_p2 = scmp.lt.s32.totalorder %s3512_s11, %s3507_s30 }
  0x3d   : > { %p3510_p8 = pnand %p3508_p4, %p3481_p7  ;;  %p3515_p5 = por %p3514_p2, %p3513_p13 }
  0x3f   : > { %p3511_p12 = pneg %p3510_p8 }
  0x41   : > { %p3516_p1 = pnand %p3515_p5, %p3511_p12 }
  0x43   : > { %3519 = shalt.err (!%p3516_p1)
}
  0x44   : > { %s3520_s15 = scalar_lea.vmem %s175_s26, 5760  ;;  %s3609_s12 = smov [#allocation6]  }
  0x45   : > { %p3521_p6 = scmp.ne.s32.totalorder %s175_s26, %s3520_s15  ;;  %s3525_s4 = sshll.u32 %s3609_s12, 4  ;;  %s3526_s4 = int_to_ptr.vmem [resolvable:$false] %s3525_s4 }
  0x46   : > { %s3527_s5 = scalar_lea.vmem %s3526_s4, 11520  ;;  %p3528_p3 = scmp.lt.s32.totalorder %s175_s26, %s3526_s4 }
  0x47   : > { %p3523_p9 = pnand %p3521_p6, %p3481_p7  ;;  %p3529_p11 = scmp.lt.s32.totalorder %s3527_s5, %s3520_s15 }
  0x49   : > { %p3524_p10 = pneg %p3523_p9  ;;  %p3530_p4 = por %p3529_p11, %p3528_p3 }
  0x4b   : > { %p3531_p8 = pnand %p3530_p4, %p3524_p10 }
  0x4d   : > { %3534 = shalt.err (!%p3531_p8)
}
  0x4e   : > { %3310 = dma.hbm_to_vmem [thread:$0]  (!%p3697_p0), %s3741_s23, 5760, %s175_s26, %s163_s29  }
  0x4f   : > { %p3949_p12 = scmp.ne.s32.totalorder %s3946_s22, 0 }
  0x50   : > { %s185_s6 = sand.u32 (!%p3949_p12), 1, %s3597_s13   ;;  %p3950_p7 = scmp.ne.s32.totalorder (!%p3949_p12), %s3945_s21, 0 }
  0x51   : > { %183 = sbr.rel (%p3949_p12) target bundleno = 518 (0x206), region = 32  ;;  %s186_s8 = scalar_lea.sflag (!%p3949_p12), [#allocation4], %s185_s6 }
  0x52   : > { %s3286_s7 = smul.u32 (!%p3949_p12), 90, %s185_s6 }
  0x54   : > { %s3766_s10 = scalar_lea.vmem (!%p3949_p12), [#allocation3], %s3286_s7 }
  0x56   : > { %3576 = dma.done.wait (%p3950_p7), %s186_s8, 1440  }
  0x57   : > { %3578 = vsyncadd (%p3950_p7), %s186_s8, 4294965856  ;;  %s194_s28 = sand.u32 1, %s3652_s16   ;;  %s3287_s19 = smul.u32 360, %s185_s6 }
  0x58   : > { %s195_s23 = scalar_lea.sflag [#allocation7], %s194_s28 }
  0x59   : > { %s3773_s24 = scalar_lea.vmem [#allocation6], %s3287_s19 }
  0x5a   : > { %3580 = dma.done.wait (%p3950_p7), %s195_s23, 5760  }
  0x5b   : > { %3582 = vsyncadd (%p3950_p7), %s195_s23, 4294961536  ;;  %p3951_p0 = scmp.eq.s32.totalorder %s3652_s16, 0 }
  0x5d   : > { %3584 = dma.done.wait (%p3951_p0), [#allocation7], 16   ;;  %p3952_p13 = pmov %p3951_p0 }
  0x5e   : > { %p3953_p2 = scmp.ne.s32.totalorder %s3652_s16, 0 }
  0x5f   : > { %3586 = vsyncadd (%p3952_p13), [#allocation7], 4294967280 }
  0x60   : > { %231 = sbr.rel (%p3953_p2) target bundleno = 103 (0x67), region = 48 }
  0x65   : > { %vm232_vm0 = vcmask 41984   ;;  %v3610_v0 = vmov 0.0  }
  0x66   : > { %233 = vst.msk [vmem:[#allocation2] sm:$0x3] %vm232_vm0, %v3610_v0 }
  0x67 PF: > { %v247_v1 = vld [vmem:[%s3773_s24] sm:$0x77]  ;;  %v248_v2 = vld [vmem:[%s3773_s24 + $0x8] sm:$0x77]  ;;  %v308_v3 = vlaneseq  ;;  %v249_v8 = vld [vmem:[%s3773_s24 + $0x10] sm:$0x77] }
  0x68   : > { %v3187_v4 = vcombine.high %v247_v1, %v247_v1  ;;  %v3186_v5 = vcombine.low %v247_v1, %v247_v1  ;;  %v3189_v6 = vcombine.high %v248_v2, %v248_v2  ;;  %v3188_v7 = vcombine.low %v248_v2, %v248_v2  ;;  %v250_v9 = vld [vmem:[%s3773_s24 + $0x18] sm:$0x77]  ;;  %v251_v26 = vld [vmem:[%s3773_s24 + $0x20] sm:$0x77]  ;;  %v252_v30 = vld [vmem:[%s3773_s24 + $0x28] sm:$0x77] }
  0x69   : > { %v3611_v10 = vmov 1966171168   ;;  %v309_v12 = vshrl.u32 %v308_v3, 7  ;;  %v3191_v13 = vcombine.high %v249_v8, %v249_v8  ;;  %v3193_v14 = vcombine.high %v250_v9, %v250_v9  ;;  %v235_v15 = vld [vmem:[%s3766_s10] sm:$0xff]  ;;  %v236_v19 = vld [vmem:[%s3766_s10 + $0x8] sm:$0xff]  ;;  %v237_v51 = vld [vmem:[%s3766_s10 + $0x10] sm:$0xff] }
  0x6a   : > { %1284 = vmatprep.subr.bf16.mxu0 %v3187_v4  ;;  %1324 = vmatprep.subr.bf16.mxu1 %v3189_v6  ;;  %v306_v11 = vunpack.c.l.s4 %v3611_v10  ;;  %v304_v16 = vcombine.high %v235_v15, %v235_v15  ;;  %v3190_v28 = vcombine.low %v249_v8, %v249_v8  ;;  %v3192_v32 = vcombine.low %v250_v9, %v250_v9  ;;  %v253_v41 = vld [vmem:[%s3773_s24 + $0x30] sm:$0x77]  ;;  %v254_v44 = vld [vmem:[%s3773_s24 + $0x38] sm:$0x77]  ;;  %v255_v54 = vld [vmem:[%s3773_s24 + $0x40] sm:$0x77] }
  0x6b   : > { %1285 = vmatpush1.bf16.xpose.msra.mxu0 %v3186_v5  ;;  %1325 = vmatpush1.bf16.xpose.msra.mxu1 %v3188_v7  ;;  %v3195_v34 = vcombine.high %v251_v26, %v251_v26  ;;  %v353_v36 = vcombine.high %v236_v19, %v236_v19  ;;  %v3197_v38 = vcombine.high %v252_v30, %v252_v30  ;;  %v256_v57 = vld [vmem:[%s3773_s24 + $0x48] sm:$0x77]  ;;  %v257_v3 = vld [vmem:[%s3773_s24 + $0x50] sm:$0x77]  ;;  %v258_v6 = vld [vmem:[%s3773_s24 + $0x58] sm:$0x77] }
  0x6c   : > { %v307_v17 = vunpack.c.0.s8 %v306_v11  ;;  %1364 = vmatprep.subr.bf16.mxu0 %v3191_v13  ;;  %1404 = vmatprep.subr.bf16.mxu1 %v3193_v14  ;;  %v3194_v43 = vcombine.low %v251_v26, %v251_v26  ;;  %v3199_v46 = vcombine.high %v253_v41, %v253_v41  ;;  %v3196_v47 = vcombine.low %v252_v30, %v252_v30  ;;  %v238_v13 = vld [vmem:[%s3766_s10 + $0x18] sm:$0xff]  ;;  %p3276_p5 = scmp.ne.s32.totalorder %s3652_s16, 7 }
  0x6d   : > { %v3201_v50 = vcombine.high %v254_v44, %v254_v44  ;;  %v3198_v56 = vcombine.low %v253_v41, %v253_v41  ;;  %v3203_v59 = vcombine.high %v255_v54, %v255_v54  ;;  %v3200_v60 = vcombine.low %v254_v44, %v254_v44  ;;  %v261_v30 = vld [vmem:[%s3773_s24 + $0x70] sm:$0x77] }
  0x6e   : > { %v3790_v18 = vsub.s32 %v307_v17, %v309_v12  ;;  %v402_v63 = vcombine.high %v237_v51, %v237_v51  ;;  %v3205_v0 = vcombine.high %v256_v57, %v256_v57  ;;  %v3202_v5 = vcombine.low %v255_v54, %v255_v54 }
  0x6f   : > { %v3207_v8 = vcombine.high %v257_v3, %v257_v3  ;;  %v3204_v9 = vcombine.low %v256_v57, %v256_v57  ;;  %v3209_v12 = vcombine.high %v258_v6, %v258_v6  ;;  %v451_v26 = vcombine.high %v238_v13, %v238_v13 }
  0x70   : > { %v311_v20 = vrot.slane %v235_v15, %v3790_v18  ;;  %v318_v21 = vrot.slane %v304_v16, %v3790_v18  ;;  %v360_v25 = vrot.slane %v236_v19, %v3790_v18  ;;  %v367_v42 = vrot.slane %v353_v36, %v3790_v18  ;;  %v259_v16 = vld [vmem:[%s3773_s24 + $0x60] sm:$0x77] }
  0x71   : > { %v409_v55 = vrot.slane %v237_v51, %v3790_v18  ;;  %v416_v4 = vrot.slane %v402_v63, %v3790_v18  ;;  %v458_v17 = vrot.slane %v238_v13, %v3790_v18  ;;  %v3206_v19 = vcombine.low %v257_v3, %v257_v3 }
  0x72   : > { %v319_v22 = vcombine.high %v311_v20, %v311_v20  ;;  %v327_v23 = vrot.slane %v311_v20, %v3790_v18  ;;  %v320_v24 = vcombine.high %v318_v21, %v318_v21  ;;  %v368_v35 = vcombine.high %v360_v25, %v360_v25  ;;  %v260_v20 = vld [vmem:[%s3773_s24 + $0x68] sm:$0x77] }
  0x73   : > { %v334_v39 = vrot.slane %v318_v21, %v3790_v18  ;;  %v369_v49 = vcombine.high %v367_v42, %v367_v42  ;;  %v376_v52 = vrot.slane %v360_v25, %v3790_v18  ;;  %v417_v62 = vcombine.high %v409_v55, %v409_v55 }
  0x74   : > { %v341_v27 = vrot.slane %v319_v22, %v3790_v18  ;;  %v348_v29 = vrot.slane %v320_v24, %v3790_v18  ;;  %v349_v31 = vcombine.high %v327_v23, %v327_v23  ;;  %v390_v40 = vrot.slane %v368_v35, %v3790_v18 }
  0x75   : > { %v350_v45 = vcombine.high %v334_v39, %v334_v39  ;;  %v397_v53 = vrot.slane %v369_v49, %v3790_v18  ;;  %v398_v58 = vcombine.high %v376_v52, %v376_v52  ;;  %v383_v1 = vrot.slane %v367_v42, %v3790_v18 }
  0x76   : > { %1302 = vmatprep.mubr.bf16.mxu0 %v341_v27  ;;  %v351_v33 = vcombine.high %v341_v27, %v341_v27  ;;  %v352_v37 = vcombine.high %v348_v29, %v348_v29  ;;  %v400_v48 = vcombine.high %v390_v40, %v390_v40  ;;  %v439_v2 = vrot.slane %v417_v62, %v3790_v18 }
  0x77   : > { %1303 = vmatmul.mubr.bf16.vlgmr.msra.gmra.mxu0 %v327_v23  ;;  %v401_v61 = vcombine.high %v397_v53, %v397_v53  ;;  %v399_v7 = vcombine.high %v383_v1, %v383_v1  ;;  %v418_v11 = vcombine.high %v416_v4, %v416_v4  ;;  %v425_v14 = vrot.slane %v409_v55, %v3790_v18 }
  0x78   : > { %1365 = vmatpush1.bf16.xpose.msra.mxu0 %v3190_v28  ;;  %1342 = vmatprep.mubr.bf16.mxu1 %v351_v33  ;;  %v449_v10 = vcombine.high %v439_v2, %v439_v2  ;;  %v3211_v22 = vcombine.high %v259_v16, %v259_v16  ;;  %v3208_v23 = vcombine.low %v258_v6, %v258_v6  ;;  %v262_v33 = vld [vmem:[%s3773_s24 + $0x78] sm:$0x77]  ;;  %vm3071_vm1 = vcmask 41984  }
  0x79   : > { %1343 = vmatmul.mubr.bf16.vlgmr.msra.gmra.mxu1 %v349_v31  ;;  %1382 = vmatprep.mubr.bf16.mxu0 %v348_v29  ;;  %v446_v15 = vrot.slane %v418_v11, %v3790_v18  ;;  %v447_v21 = vcombine.high %v425_v14, %v425_v14  ;;  %v466_v25 = vcombine.high %v458_v17, %v458_v17 }
  0x7a   : > { %1405 = vmatpush1.bf16.xpose.msra.mxu1 %v3192_v32  ;;  %1444 = vmatprep.subr.bf16.mxu0 %v3195_v34  ;;  %v3213_v27 = vcombine.high %v260_v20, %v260_v20  ;;  %v432_v28 = vrot.slane %v416_v4, %v3790_v18  ;;  %v465_v31 = vrot.slane %v451_v26, %v3790_v18 }
  0x7b   : > { %1422 = vmatprep.mubr.bf16.mxu1 %v352_v37  ;;  %1484 = vmatprep.subr.bf16.mxu1 %v3197_v38  ;;  %v450_v24 = vcombine.high %v446_v15, %v446_v15  ;;  %v488_v29 = vrot.slane %v466_v25, %v3790_v18  ;;  %v3210_v32 = vcombine.low %v259_v16, %v259_v16 }
  0x7c   : > { %v448_v34 = vcombine.high %v432_v28, %v432_v28  ;;  %v3215_v35 = vcombine.high %v261_v30, %v261_v30  ;;  %v3212_v36 = vcombine.low %v260_v20, %v260_v20  ;;  %v467_v38 = vcombine.high %v465_v31, %v465_v31 }
  0x7d   : > { %v498_v37 = vcombine.high %v488_v29, %v488_v29  ;;  %v474_v41 = vrot.slane %v458_v17, %v3790_v18  ;;  %v3216_v49 = vcombine.low %v262_v33, %v262_v33  ;;  %v481_v54 = vrot.slane %v465_v31, %v3790_v18 }
  0x7e   : > { %v495_v42 = vrot.slane %v467_v38, %v3790_v18 }
  0x7f   : > { %1383 = vmatmul.mubr.bf16.vlgmr.msra.gmra.mxu0 %v334_v39  ;;  %v3217_v39 = vcombine.high %v262_v33, %v262_v33 }
  0x80   : > { %1445 = vmatpush1.bf16.xpose.msra.mxu0 %v3194_v43  ;;  %1462 = vmatprep.mubr.bf16.mxu0 %v390_v40  ;;  %v239_v40 = vld [vmem:[%s3766_s10 + $0x20] sm:$0xff] }
  0x81   : > { %1423 = vmatmul.mubr.bf16.vlgmr.msra.gmra.mxu1 %v350_v45  ;;  %1524 = vmatprep.subr.bf16.mxu0 %v3199_v46  ;;  %v263_v43 = vld [vmem:[%s3773_s24 + $0x80] sm:$0x77]  ;;  %v507_v44 = vrot.slane %v239_v40, %v3790_v18  ;;  %v3214_v45 = vcombine.low %v261_v30, %v261_v30  ;;  %v264_v46 = vld [vmem:[%s3773_s24 + $0x88] sm:$0x77] }
  0x82   : > { %1485 = vmatpush1.bf16.xpose.msra.mxu1 %v3196_v47  ;;  %1502 = vmatprep.mubr.bf16.mxu1 %v400_v48  ;;  %v496_v47 = vcombine.high %v474_v41, %v474_v41  ;;  %v3219_v48 = vcombine.high %v263_v43, %v263_v43  ;;  %v3220_v62 = vcombine.low %v264_v46, %v264_v46 }
  0x83   : > { %1564 = vmatprep.subr.bf16.mxu1 %v3201_v50  ;;  %v499_v50 = vcombine.high %v495_v42, %v495_v42  ;;  %v515_v51 = vcombine.high %v507_v44, %v507_v44  ;;  %v523_v3 = vrot.slane %v507_v44, %v3790_v18 }
  0x85   : > { %v537_v55 = vrot.slane %v515_v51, %v3790_v18 }
  0x87   : > { %1463 = vmatmul.mubr.bf16.vlgmr.msra.gmra.mxu0 %v376_v52  ;;  %v500_v52 = vcombine.high %v239_v40, %v239_v40  ;;  %v547_v63 = vcombine.high %v537_v55, %v537_v55 }
  0x88   : > { %1525 = vmatpush1.bf16.xpose.msra.mxu0 %v3198_v56  ;;  %1542 = vmatprep.mubr.bf16.mxu0 %v397_v53  ;;  %v3221_v53 = vcombine.high %v264_v46, %v264_v46  ;;  %v265_v56 = vld [vmem:[%s3773_s24 + $0x90] sm:$0x77] }
  0x89   : > { %1503 = vmatmul.mubr.bf16.vlgmr.msra.gmra.mxu1 %v398_v58  ;;  %1604 = vmatprep.subr.bf16.mxu0 %v3203_v59  ;;  %v514_v57 = vrot.slane %v500_v52, %v3790_v18  ;;  %v3218_v58 = vcombine.low %v263_v43, %v263_v43  ;;  %v266_v59 = vld [vmem:[%s3773_s24 + $0x98] sm:$0x77] }
  0x8a   : > { %1565 = vmatpush1.bf16.xpose.msra.mxu1 %v3200_v60  ;;  %1582 = vmatprep.mubr.bf16.mxu1 %v401_v61  ;;  %v497_v60 = vcombine.high %v481_v54, %v481_v54  ;;  %v3223_v61 = vcombine.high %v265_v56, %v265_v56  ;;  %v3224_v11 = vcombine.low %v266_v59, %v266_v59 }
  0x8b   : > { %1644 = vmatprep.subr.bf16.mxu1 %v3205_v0  ;;  %v516_v0 = vcombine.high %v514_v57, %v514_v57  ;;  %v530_v16 = vrot.slane %v514_v57, %v3790_v18 }
  0x8d   : > { %v544_v4 = vrot.slane %v516_v0, %v3790_v18 }
  0x8f   : > { %1543 = vmatmul.mubr.bf16.vlgmr.msra.gmra.mxu0 %v383_v1  ;;  %v3225_v1 = vcombine.high %v266_v59, %v266_v59 }
  0x90   : > { %1605 = vmatpush1.bf16.xpose.msra.mxu0 %v3202_v5  ;;  %1622 = vmatprep.mubr.bf16.mxu0 %v439_v2  ;;  %v240_v2 = vld [vmem:[%s3766_s10 + $0x28] sm:$0xff] }
  0x91   : > { %1583 = vmatmul.mubr.bf16.vlgmr.msra.gmra.mxu1 %v399_v7  ;;  %1684 = vmatprep.subr.bf16.mxu0 %v3207_v8  ;;  %v267_v5 = vld [vmem:[%s3773_s24 + $0xa0] sm:$0x77]  ;;  %v556_v6 = vrot.slane %v240_v2, %v3790_v18  ;;  %v3222_v7 = vcombine.low %v265_v56, %v265_v56  ;;  %v268_v8 = vld [vmem:[%s3773_s24 + $0xa8] sm:$0x77] }
  0x92   : > { %1645 = vmatpush1.bf16.xpose.msra.mxu1 %v3204_v9  ;;  %1662 = vmatprep.mubr.bf16.mxu1 %v449_v10  ;;  %v545_v9 = vcombine.high %v523_v3, %v523_v3  ;;  %v3227_v10 = vcombine.high %v267_v5, %v267_v5  ;;  %v3228_v25 = vcombine.low %v268_v8, %v268_v8 }
  0x93   : > { %1724 = vmatprep.subr.bf16.mxu1 %v3209_v12  ;;  %v548_v12 = vcombine.high %v544_v4, %v544_v4  ;;  %v564_v13 = vcombine.high %v556_v6, %v556_v6  ;;  %v572_v30 = vrot.slane %v556_v6, %v3790_v18 }
  0x95   : > { %v586_v17 = vrot.slane %v564_v13, %v3790_v18 }
  0x97   : > { %1623 = vmatmul.mubr.bf16.vlgmr.msra.gmra.mxu0 %v425_v14  ;;  %v549_v14 = vcombine.high %v240_v2, %v240_v2  ;;  %v596_v26 = vcombine.high %v586_v17, %v586_v17 }
  0x98   : > { %1685 = vmatpush1.bf16.xpose.msra.mxu0 %v3206_v19  ;;  %1702 = vmatprep.mubr.bf16.mxu0 %v446_v15  ;;  %v3229_v15 = vcombine.high %v268_v8, %v268_v8  ;;  %v269_v19 = vld [vmem:[%s3773_s24 + $0xb0] sm:$0x77] }
  0x99   : > { %1663 = vmatmul.mubr.bf16.vlgmr.msra.gmra.mxu1 %v447_v21  ;;  %1764 = vmatprep.subr.bf16.mxu0 %v3211_v22  ;;  %v563_v20 = vrot.slane %v549_v14, %v3790_v18  ;;  %v3226_v21 = vcombine.low %v267_v5, %v267_v5  ;;  %v270_v22 = vld [vmem:[%s3773_s24 + $0xb8] sm:$0x77] }
  0x9a   : > { %1725 = vmatpush1.bf16.xpose.msra.mxu1 %v3208_v23  ;;  %1742 = vmatprep.mubr.bf16.mxu1 %v450_v24  ;;  %v546_v23 = vcombine.high %v530_v16, %v530_v16  ;;  %v3231_v24 = vcombine.high %v269_v19, %v269_v19  ;;  %v3232_v38 = vcombine.low %v270_v22, %v270_v22 }
  0x9b   : > { %1804 = vmatprep.subr.bf16.mxu1 %v3213_v27  ;;  %v565_v27 = vcombine.high %v563_v20, %v563_v20  ;;  %v579_v43 = vrot.slane %v563_v20, %v3790_v18 }
  0x9d   : > { %v593_v31 = vrot.slane %v565_v27, %v3790_v18 }
  0x9f   : > { %1703 = vmatmul.mubr.bf16.vlgmr.msra.gmra.mxu0 %v432_v28  ;;  %v3233_v28 = vcombine.high %v270_v22, %v270_v22 }
  0xa0   : > { %1765 = vmatpush1.bf16.xpose.msra.mxu0 %v3210_v32  ;;  %1782 = vmatprep.mubr.bf16.mxu0 %v488_v29  ;;  %v241_v29 = vld [vmem:[%s3766_s10 + $0x30] sm:$0xff] }
  0xa1   : > { %1743 = vmatmul.mubr.bf16.vlgmr.msra.gmra.mxu1 %v448_v34  ;;  %1844 = vmatprep.subr.bf16.mxu0 %v3215_v35  ;;  %v271_v32 = vld [vmem:[%s3773_s24 + $0xc0] sm:$0x77]  ;;  %v605_v33 = vrot.slane %v241_v29, %v3790_v18  ;;  %v3230_v34 = vcombine.low %v269_v19, %v269_v19  ;;  %v272_v35 = vld [vmem:[%s3773_s24 + $0xc8] sm:$0x77] }
  0xa2   : > { %1805 = vmatpush1.bf16.xpose.msra.mxu1 %v3212_v36  ;;  %1822 = vmatprep.mubr.bf16.mxu1 %v498_v37  ;;  %v594_v36 = vcombine.high %v572_v30, %v572_v30  ;;  %v3235_v37 = vcombine.high %v271_v32, %v271_v32  ;;  %v3236_v51 = vcombine.low %v272_v35, %v272_v35 }
  0xa3   : > { %1884 = vmatprep.subr.bf16.mxu1 %v3217_v39  ;;  %v597_v39 = vcombine.high %v593_v31, %v593_v31  ;;  %v613_v40 = vcombine.high %v605_v33, %v605_v33  ;;  %v621_v56 = vrot.slane %v605_v33, %v3790_v18 }
  0xa5   : > { %v635_v44 = vrot.slane %v613_v40, %v3790_v18 }
  0xa7   : > { %1783 = vmatmul.mubr.bf16.vlgmr.msra.gmra.mxu0 %v474_v41  ;;  %v598_v41 = vcombine.high %v241_v29, %v241_v29  ;;  %v645_v52 = vcombine.high %v635_v44, %v635_v44 }
  0xa8   : > { %1845 = vmatpush1.bf16.xpose.msra.mxu0 %v3214_v45  ;;  %1862 = vmatprep.mubr.bf16.mxu0 %v495_v42  ;;  %v3237_v42 = vcombine.high %v272_v35, %v272_v35  ;;  %v273_v45 = vld [vmem:[%s3773_s24 + $0xd0] sm:$0x77] }
  0xa9   : > { %1823 = vmatmul.mubr.bf16.vlgmr.msra.gmra.mxu1 %v496_v47  ;;  %1924 = vmatprep.subr.bf16.mxu0 %v3219_v48  ;;  %v612_v46 = vrot.slane %v598_v41, %v3790_v18  ;;  %v3234_v47 = vcombine.low %v271_v32, %v271_v32  ;;  %v274_v48 = vld [vmem:[%s3773_s24 + $0xd8] sm:$0x77] }
  0xaa   : > { %1885 = vmatpush1.bf16.xpose.msra.mxu1 %v3216_v49  ;;  %1902 = vmatprep.mubr.bf16.mxu1 %v499_v50  ;;  %v595_v49 = vcombine.high %v579_v43, %v579_v43  ;;  %v3239_v50 = vcombine.high %v273_v45, %v273_v45  ;;  %v3240_v0 = vcombine.low %v274_v48, %v274_v48 }
  0xab   : > { %1964 = vmatprep.subr.bf16.mxu1 %v3221_v53  ;;  %v614_v53 = vcombine.high %v612_v46, %v612_v46  ;;  %v628_v5 = vrot.slane %v612_v46, %v3790_v18 }
  0xad   : > { %v642_v57 = vrot.slane %v614_v53, %v3790_v18 }
  0xaf   : > { %1863 = vmatmul.mubr.bf16.vlgmr.msra.gmra.mxu0 %v481_v54  ;;  %v3241_v54 = vcombine.high %v274_v48, %v274_v48 }
  0xb0   : > { %1925 = vmatpush1.bf16.xpose.msra.mxu0 %v3218_v58  ;;  %1942 = vmatprep.mubr.bf16.mxu0 %v537_v55  ;;  %v242_v55 = vld [vmem:[%s3766_s10 + $0x38] sm:$0xff] }
  0xb1   : > { %1903 = vmatmul.mubr.bf16.vlgmr.msra.gmra.mxu1 %v497_v60  ;;  %2004 = vmatprep.subr.bf16.mxu0 %v3223_v61  ;;  %v275_v58 = vld [vmem:[%s3773_s24 + $0xe0] sm:$0x77]  ;;  %v654_v59 = vrot.slane %v242_v55, %v3790_v18  ;;  %v3238_v60 = vcombine.low %v273_v45, %v273_v45  ;;  %v276_v61 = vld [vmem:[%s3773_s24 + $0xe8] sm:$0x77] }
  0xb2   : > { %1965 = vmatpush1.bf16.xpose.msra.mxu1 %v3220_v62  ;;  %1982 = vmatprep.mubr.bf16.mxu1 %v547_v63  ;;  %v643_v62 = vcombine.high %v621_v56, %v621_v56  ;;  %v3243_v63 = vcombine.high %v275_v58, %v275_v58  ;;  %v3244_v13 = vcombine.low %v276_v61, %v276_v61 }
  0xb3   : > { %2044 = vmatprep.subr.bf16.mxu1 %v3225_v1  ;;  %v646_v1 = vcombine.high %v642_v57, %v642_v57  ;;  %v662_v2 = vcombine.high %v654_v59, %v654_v59  ;;  %v670_v19 = vrot.slane %v654_v59, %v3790_v18 }
  0xb5   : > { %v684_v6 = vrot.slane %v662_v2, %v3790_v18 }
  0xb7   : > { %1943 = vmatmul.mubr.bf16.vlgmr.msra.gmra.mxu0 %v523_v3  ;;  %v647_v3 = vcombine.high %v242_v55, %v242_v55  ;;  %v694_v14 = vcombine.high %v684_v6, %v684_v6 }
  0xb8   : > { %2005 = vmatpush1.bf16.xpose.msra.mxu0 %v3222_v7  ;;  %2022 = vmatprep.mubr.bf16.mxu0 %v544_v4  ;;  %v3245_v4 = vcombine.high %v276_v61, %v276_v61  ;;  %v277_v7 = vld [vmem:[%s3773_s24 + $0xf0] sm:$0x77] }
  0xb9   : > { %1983 = vmatmul.mubr.bf16.vlgmr.msra.gmra.mxu1 %v545_v9  ;;  %2084 = vmatprep.subr.bf16.mxu0 %v3227_v10  ;;  %v661_v8 = vrot.slane %v647_v3, %v3790_v18  ;;  %v3242_v9 = vcombine.low %v275_v58, %v275_v58  ;;  %v278_v10 = vld [vmem:[%s3773_s24 + $0xf8] sm:$0x77] }
  0xba   : > { %2045 = vmatpush1.bf16.xpose.msra.mxu1 %v3224_v11  ;;  %2062 = vmatprep.mubr.bf16.mxu1 %v548_v12  ;;  %v644_v11 = vcombine.high %v628_v5, %v628_v5  ;;  %v3247_v12 = vcombine.high %v277_v7, %v277_v7  ;;  %v3248_v27 = vcombine.low %v278_v10, %v278_v10 }
  0xbb   : > { %2124 = vmatprep.subr.bf16.mxu1 %v3229_v15  ;;  %v663_v15 = vcombine.high %v661_v8, %v661_v8  ;;  %v677_v32 = vrot.slane %v661_v8, %v3790_v18 }
  0xbd   : > { %v691_v20 = vrot.slane %v663_v15, %v3790_v18 }
  0xbf   : > { %2023 = vmatmul.mubr.bf16.vlgmr.msra.gmra.mxu0 %v530_v16  ;;  %v3249_v16 = vcombine.high %v278_v10, %v278_v10 }
  0xc0   : > { %2085 = vmatpush1.bf16.xpose.msra.mxu0 %v3226_v21  ;;  %2102 = vmatprep.mubr.bf16.mxu0 %v586_v17  ;;  %v243_v17 = vld [vmem:[%s3766_s10 + $0x40] sm:$0xff] }
  0xc1   : > { %2063 = vmatmul.mubr.bf16.vlgmr.msra.gmra.mxu1 %v546_v23  ;;  %2164 = vmatprep.subr.bf16.mxu0 %v3231_v24  ;;  %v279_v21 = vld [vmem:[%s3773_s24 + $0x100] sm:$0x77]  ;;  %v703_v22 = vrot.slane %v243_v17, %v3790_v18  ;;  %v3246_v23 = vcombine.low %v277_v7, %v277_v7  ;;  %v280_v24 = vld [vmem:[%s3773_s24 + $0x108] sm:$0x77] }
  0xc2   : > { %2125 = vmatpush1.bf16.xpose.msra.mxu1 %v3228_v25  ;;  %2142 = vmatprep.mubr.bf16.mxu1 %v596_v26  ;;  %v692_v25 = vcombine.high %v670_v19, %v670_v19  ;;  %v3251_v26 = vcombine.high %v279_v21, %v279_v21  ;;  %v3252_v40 = vcombine.low %v280_v24, %v280_v24 }
  0xc3   : > { %2204 = vmatprep.subr.bf16.mxu1 %v3233_v28  ;;  %v695_v28 = vcombine.high %v691_v20, %v691_v20  ;;  %v711_v29 = vcombine.high %v703_v22, %v703_v22  ;;  %v719_v45 = vrot.slane %v703_v22, %v3790_v18 }
  0xc5   : > { %v733_v33 = vrot.slane %v711_v29, %v3790_v18 }
  0xc7   : > { %2103 = vmatmul.mubr.bf16.vlgmr.msra.gmra.mxu0 %v572_v30  ;;  %v696_v30 = vcombine.high %v243_v17, %v243_v17  ;;  %v743_v41 = vcombine.high %v733_v33, %v733_v33 }
  0xc8   : > { %2165 = vmatpush1.bf16.xpose.msra.mxu0 %v3230_v34  ;;  %2182 = vmatprep.mubr.bf16.mxu0 %v593_v31  ;;  %v3253_v31 = vcombine.high %v280_v24, %v280_v24  ;;  %v281_v34 = vld [vmem:[%s3773_s24 + $0x110] sm:$0x77] }
  0xc9   : > { %2143 = vmatmul.mubr.bf16.vlgmr.msra.gmra.mxu1 %v594_v36  ;;  %2244 = vmatprep.subr.bf16.mxu0 %v3235_v37  ;;  %v710_v35 = vrot.slane %v696_v30, %v3790_v18  ;;  %v3250_v36 = vcombine.low %v279_v21, %v279_v21  ;;  %v282_v37 = vld [vmem:[%s3773_s24 + $0x118] sm:$0x77] }
  0xca   : > { %2205 = vmatpush1.bf16.xpose.msra.mxu1 %v3232_v38  ;;  %2222 = vmatprep.mubr.bf16.mxu1 %v597_v39  ;;  %v693_v38 = vcombine.high %v677_v32, %v677_v32  ;;  %v3255_v39 = vcombine.high %v281_v34, %v281_v34  ;;  %v3256_v53 = vcombine.low %v282_v37, %v282_v37 }
  0xcb   : > { %2284 = vmatprep.subr.bf16.mxu1 %v3237_v42  ;;  %v712_v42 = vcombine.high %v710_v35, %v710_v35  ;;  %v726_v58 = vrot.slane %v710_v35, %v3790_v18  ;;  %v291_v35 = vld [vmem:[%s3773_s24 + $0x160] sm:$0x77] }
  0xcd   : > { %v740_v46 = vrot.slane %v712_v42, %v3790_v18 }
  0xcf   : > { %2183 = vmatmul.mubr.bf16.vlgmr.msra.gmra.mxu0 %v579_v43  ;;  %v3257_v43 = vcombine.high %v282_v37, %v282_v37 }
  0xd0   : > { %2245 = vmatpush1.bf16.xpose.msra.mxu0 %v3234_v47  ;;  %2262 = vmatprep.mubr.bf16.mxu0 %v635_v44  ;;  %v244_v44 = vld [vmem:[%s3766_s10 + $0x48] sm:$0xff] }
  0xd1   : > { %2223 = vmatmul.mubr.bf16.vlgmr.msra.gmra.mxu1 %v595_v49  ;;  %2324 = vmatprep.subr.bf16.mxu0 %v3239_v50  ;;  %v283_v47 = vld [vmem:[%s3773_s24 + $0x120] sm:$0x77]  ;;  %v752_v48 = vrot.slane %v244_v44, %v3790_v18  ;;  %v3254_v49 = vcombine.low %v281_v34, %v281_v34  ;;  %v284_v50 = vld [vmem:[%s3773_s24 + $0x128] sm:$0x77] }
  0xd2   : > { %2285 = vmatpush1.bf16.xpose.msra.mxu1 %v3236_v51  ;;  %2302 = vmatprep.mubr.bf16.mxu1 %v645_v52  ;;  %v741_v51 = vcombine.high %v719_v45, %v719_v45  ;;  %v3259_v52 = vcombine.high %v283_v47, %v283_v47  ;;  %v3260_v2 = vcombine.low %v284_v50, %v284_v50 }
  0xd3   : > { %2364 = vmatprep.subr.bf16.mxu1 %v3241_v54  ;;  %v744_v54 = vcombine.high %v740_v46, %v740_v46  ;;  %v760_v55 = vcombine.high %v752_v48, %v752_v48  ;;  %v768_v7 = vrot.slane %v752_v48, %v3790_v18 }
  0xd5   : > { %v782_v59 = vrot.slane %v760_v55, %v3790_v18 }
  0xd7   : > { %2263 = vmatmul.mubr.bf16.vlgmr.msra.gmra.mxu0 %v621_v56  ;;  %v745_v56 = vcombine.high %v244_v44, %v244_v44  ;;  %v792_v3 = vcombine.high %v782_v59, %v782_v59  ;;  %v3274_v44 = vcombine.low %v291_v35, %v291_v35 }
  0xd8   : > { %2325 = vmatpush1.bf16.xpose.msra.mxu0 %v3238_v60  ;;  %2342 = vmatprep.mubr.bf16.mxu0 %v642_v57  ;;  %v3261_v57 = vcombine.high %v284_v50, %v284_v50  ;;  %v285_v60 = vld [vmem:[%s3773_s24 + $0x130] sm:$0x77] }
  0xd9   : > { %2303 = vmatmul.mubr.bf16.vlgmr.msra.gmra.mxu1 %v643_v62  ;;  %2404 = vmatprep.subr.bf16.mxu0 %v3243_v63  ;;  %v759_v61 = vrot.slane %v745_v56, %v3790_v18  ;;  %v3258_v62 = vcombine.low %v283_v47, %v283_v47  ;;  %v286_v63 = vld [vmem:[%s3773_s24 + $0x138] sm:$0x77] }
  0xda   : > { %2365 = vmatpush1.bf16.xpose.msra.mxu1 %v3240_v0  ;;  %2382 = vmatprep.mubr.bf16.mxu1 %v646_v1  ;;  %v742_v0 = vcombine.high %v726_v58, %v726_v58  ;;  %v3263_v1 = vcombine.high %v285_v60, %v285_v60  ;;  %v3264_v15 = vcombine.low %v286_v63, %v286_v63 }
  0xdb   : > { %2444 = vmatprep.subr.bf16.mxu1 %v3245_v4  ;;  %v761_v4 = vcombine.high %v759_v61, %v759_v61  ;;  %v775_v21 = vrot.slane %v759_v61, %v3790_v18 }
  0xdd   : > { %v789_v8 = vrot.slane %v761_v4, %v3790_v18 }
  0xdf   : > { %2343 = vmatmul.mubr.bf16.vlgmr.msra.gmra.mxu0 %v628_v5  ;;  %v3265_v5 = vcombine.high %v286_v63, %v286_v63 }
  0xe0   : > { %2405 = vmatpush1.bf16.xpose.msra.mxu0 %v3242_v9  ;;  %2422 = vmatprep.mubr.bf16.mxu0 %v684_v6  ;;  %v245_v6 = vld [vmem:[%s3766_s10 + $0x50] sm:$0xff] }
  0xe1   : > { %2383 = vmatmul.mubr.bf16.vlgmr.msra.gmra.mxu1 %v644_v11  ;;  %2484 = vmatprep.subr.bf16.mxu0 %v3247_v12  ;;  %v287_v9 = vld [vmem:[%s3773_s24 + $0x140] sm:$0x77]  ;;  %v801_v10 = vrot.slane %v245_v6, %v3790_v18  ;;  %v3262_v11 = vcombine.low %v285_v60, %v285_v60  ;;  %v288_v12 = vld [vmem:[%s3773_s24 + $0x148] sm:$0x77] }
  0xe2   : > { %2445 = vmatpush1.bf16.xpose.msra.mxu1 %v3244_v13  ;;  %2462 = vmatprep.mubr.bf16.mxu1 %v694_v14  ;;  %v790_v13 = vcombine.high %v768_v7, %v768_v7  ;;  %v3267_v14 = vcombine.high %v287_v9, %v287_v9  ;;  %v3268_v29 = vcombine.low %v288_v12, %v288_v12 }
  0xe3   : > { %2524 = vmatprep.subr.bf16.mxu1 %v3249_v16  ;;  %v793_v16 = vcombine.high %v789_v8, %v789_v8  ;;  %v809_v17 = vcombine.high %v801_v10, %v801_v10 }
  0xe5   : > { %v831_v22 = vrot.slane %v809_v17, %v3790_v18 }
  0xe7   : > { %2423 = vmatmul.mubr.bf16.vlgmr.msra.gmra.mxu0 %v670_v19  ;;  %v794_v19 = vcombine.high %v245_v6, %v245_v6  ;;  %v841_v30 = vcombine.high %v831_v22, %v831_v22 }
  0xe8   : > { %2485 = vmatpush1.bf16.xpose.msra.mxu0 %v3246_v23  ;;  %2502 = vmatprep.mubr.bf16.mxu0 %v691_v20  ;;  %v3269_v20 = vcombine.high %v288_v12, %v288_v12  ;;  %v289_v23 = vld [vmem:[%s3773_s24 + $0x150] sm:$0x77] }
  0xe9   : > { %2463 = vmatmul.mubr.bf16.vlgmr.msra.gmra.mxu1 %v692_v25  ;;  %2564 = vmatprep.subr.bf16.mxu0 %v3251_v26  ;;  %v808_v24 = vrot.slane %v794_v19, %v3790_v18  ;;  %v3266_v25 = vcombine.low %v287_v9, %v287_v9  ;;  %v290_v26 = vld [vmem:[%s3773_s24 + $0x158] sm:$0x77] }
  0xea   : > { %2525 = vmatpush1.bf16.xpose.msra.mxu1 %v3248_v27  ;;  %2542 = vmatprep.mubr.bf16.mxu1 %v695_v28  ;;  %v791_v27 = vcombine.high %v775_v21, %v775_v21  ;;  %v3271_v28 = vcombine.high %v289_v23, %v289_v23 }
  0xeb   : > { %2604 = vmatprep.subr.bf16.mxu1 %v3253_v31  ;;  %v810_v31 = vcombine.high %v808_v24, %v808_v24 }
  0xed   : > { %v838_v34 = vrot.slane %v810_v31, %v3790_v18 }
  0xef   : > { %2503 = vmatmul.mubr.bf16.vlgmr.msra.gmra.mxu0 %v677_v32  ;;  %v3273_v32 = vcombine.high %v290_v26, %v290_v26 }
  0xf0   : > { %2565 = vmatpush1.bf16.xpose.msra.mxu0 %v3250_v36  ;;  %2582 = vmatprep.mubr.bf16.mxu0 %v733_v33  ;;  %v817_v33 = vrot.slane %v801_v10, %v3790_v18  ;;  %v3270_v36 = vcombine.low %v289_v23, %v289_v23 }
  0xf1   : > { %2543 = vmatmul.mubr.bf16.vlgmr.msra.gmra.mxu1 %v693_v38  ;;  %2644 = vmatprep.subr.bf16.mxu0 %v3255_v39  ;;  %v3275_v38 = vcombine.high %v291_v35, %v291_v35  ;;  %v3185_v39 = vld.sshfl [vmem:[%s3766_s10 + $0x58] sm:$0x11 pattern:$0x75316420] }
  0xf2   : > { %2605 = vmatpush1.bf16.xpose.msra.mxu1 %v3252_v40  ;;  %2622 = vmatprep.mubr.bf16.mxu1 %v743_v41  ;;  %v839_v37 = vcombine.high %v817_v33, %v817_v33  ;;  %v3272_v40 = vcombine.low %v290_v26, %v290_v26  ;;  %v842_v41 = vcombine.high %v838_v34, %v838_v34 }
  0xf3   : > { %2684 = vmatprep.subr.bf16.mxu1 %v3257_v43  ;;  %v850_v42 = vcombine.high %v3185_v39, %v3185_v39  ;;  %v824_v43 = vrot.slane %v808_v24, %v3790_v18  ;;  %v857_v47 = vrot.slane %v3185_v39, %v3790_v18 }
  0xf7   : > { %2583 = vmatmul.mubr.bf16.vlgmr.msra.gmra.mxu0 %v719_v45  ;;  %v864_v45 = vrot.slane %v850_v42, %v3790_v18 }
  0xf8   : > { %2645 = vmatpush1.bf16.xpose.msra.mxu0 %v3254_v49  ;;  %2662 = vmatprep.mubr.bf16.mxu0 %v740_v46  ;;  %v840_v46 = vcombine.high %v824_v43, %v824_v43 }
  0xf9   : > { %2623 = vmatmul.mubr.bf16.vlgmr.msra.gmra.mxu1 %v741_v51  ;;  %2724 = vmatprep.subr.bf16.mxu0 %v3259_v52 }
  0xfa   : > { %2685 = vmatpush1.bf16.xpose.msra.mxu1 %v3256_v53  ;;  %2702 = vmatprep.mubr.bf16.mxu1 %v744_v54 }
  0xfb   : > { %2764 = vmatprep.subr.bf16.mxu1 %v3261_v57 }
  0xff   : > { %2663 = vmatmul.mubr.bf16.vlgmr.msra.gmra.mxu0 %v726_v58 }
 0x100   : > { %2725 = vmatpush1.bf16.xpose.msra.mxu0 %v3258_v62  ;;  %2742 = vmatprep.mubr.bf16.mxu0 %v782_v59 }
 0x101   : > { %2703 = vmatmul.mubr.bf16.vlgmr.msra.gmra.mxu1 %v742_v0  ;;  %2804 = vmatprep.subr.bf16.mxu0 %v3263_v1 }
 0x102   : > { %2765 = vmatpush1.bf16.xpose.msra.mxu1 %v3260_v2  ;;  %2782 = vmatprep.mubr.bf16.mxu1 %v792_v3 }
 0x103   : > { %2844 = vmatprep.subr.bf16.mxu1 %v3265_v5 }
 0x107   : > { %2743 = vmatmul.mubr.bf16.vlgmr.msra.gmra.mxu0 %v768_v7 }
 0x108   : > { %2805 = vmatpush1.bf16.xpose.msra.mxu0 %v3262_v11  ;;  %2822 = vmatprep.mubr.bf16.mxu0 %v789_v8 }
 0x109   : > { %2783 = vmatmul.mubr.bf16.vlgmr.msra.gmra.mxu1 %v790_v13  ;;  %2884 = vmatprep.subr.bf16.mxu0 %v3267_v14 }
 0x10a   : > { %2845 = vmatpush1.bf16.xpose.msra.mxu1 %v3264_v15  ;;  %2862 = vmatprep.mubr.bf16.mxu1 %v793_v16 }
 0x10b   : > { %2924 = vmatprep.subr.bf16.mxu1 %v3269_v20 }
 0x10f   : > { %2823 = vmatmul.mubr.bf16.vlgmr.msra.gmra.mxu0 %v775_v21 }
 0x110   : > { %2885 = vmatpush1.bf16.xpose.msra.mxu0 %v3266_v25  ;;  %2902 = vmatprep.mubr.bf16.mxu0 %v831_v22 }
 0x111   : > { %2863 = vmatmul.mubr.bf16.vlgmr.msra.gmra.mxu1 %v791_v27  ;;  %2964 = vmatprep.subr.bf16.mxu0 %v3271_v28 }
 0x112   : > { %2925 = vmatpush1.bf16.xpose.msra.mxu1 %v3268_v29  ;;  %2942 = vmatprep.mubr.bf16.mxu1 %v841_v30 }
 0x113   : > { %3004 = vmatprep.subr.bf16.mxu1 %v3273_v32 }
 0x117   : > { %2903 = vmatmul.mubr.bf16.vlgmr.msra.gmra.mxu0 %v817_v33 }
 0x118   : > { %2965 = vmatpush1.bf16.xpose.msra.mxu0 %v3270_v36  ;;  %2982 = vmatprep.mubr.bf16.mxu0 %v838_v34 }
 0x119   : > { %2943 = vmatmul.mubr.bf16.vlgmr.msra.gmra.mxu1 %v839_v37  ;;  %3044 = vmatprep.subr.bf16.mxu0 %v3275_v38 }
 0x11a   : > { %3005 = vmatpush1.bf16.xpose.msra.mxu1 %v3272_v40  ;;  %3022 = vmatprep.mubr.bf16.mxu1 %v842_v41 }
 0x11f   : > { %2983 = vmatmul.mubr.bf16.vlgmr.msra.gmra.mxu0 %v824_v43 }
 0x120   : > { %3045 = vmatpush1.bf16.xpose.msra.mxu0 %v3274_v44  ;;  %3062 = vmatprep.mubr.bf16.mxu0 %v864_v45 }
 0x121   : > { %3023 = vmatmul.mubr.bf16.vlgmr.msra.gmra.mxu1 %v840_v46 }
 0x127   : > { %3063 = vmatmul.mubr.bf16.vlgmr.msra.gmra.mxu0 %v857_v47 }
 0x137   : > { %v1304_v48 = vpop.f32.mrf.mxu0 }
 0x139   : > { %v1306_v49 = vpop.f32.mrf.mxu0  ;;  %v1344_v50 = vpop.f32.mrf.mxu1 }
 0x13a   : > { %v1345_v51 = vadd.f32 %v1344_v50, %v1304_v48 }
 0x13b   : > { %v1307_v52 = vpop.f32.mrf.mxu0  ;;  %v1346_v53 = vpop.f32.mrf.mxu1 }
 0x13d   : > { %v1308_v54 = vpop.f32.mrf.mxu0  ;;  %v1347_v55 = vpop.f32.mrf.mxu1 }
 0x13f   : > { %v1348_v56 = vpop.f32.mrf.mxu1  ;;  %v1384_v57 = vpop.f32.mrf.mxu0 }
 0x140   : > { %v1385_v58 = vadd.f32 %v1384_v57, %v1345_v51 }
 0x141   : > { %v1386_v59 = vpop.f32.mrf.mxu0  ;;  %v1424_v60 = vpop.f32.mrf.mxu1 }
 0x142   : > { %v1425_v61 = vadd.f32 %v1424_v60, %v1385_v58 }
 0x143   : > { %v1387_v62 = vpop.f32.mrf.mxu0  ;;  %v1426_v63 = vpop.f32.mrf.mxu1 }
 0x145   : > { %v1388_v0 = vpop.f32.mrf.mxu0  ;;  %v1427_v1 = vpop.f32.mrf.mxu1 }
 0x147   : > { %v1428_v18 = vpop.f32.mrf.mxu1  ;;  %v1464_v2 = vpop.f32.mrf.mxu0 }
 0x148   : > { %v1465_v3 = vadd.f32 %v1464_v2, %v1425_v61 }
 0x149   : > { %v1466_v4 = vpop.f32.mrf.mxu0  ;;  %v1504_v5 = vpop.f32.mrf.mxu1 }
 0x14a   : > { %v1505_v6 = vadd.f32 %v1504_v5, %v1465_v3 }
 0x14b   : > { %v1467_v7 = vpop.f32.mrf.mxu0  ;;  %v1506_v8 = vpop.f32.mrf.mxu1 }
 0x14d   : > { %v1468_v9 = vpop.f32.mrf.mxu0  ;;  %v1507_v10 = vpop.f32.mrf.mxu1 }
 0x14f   : > { %v1508_v11 = vpop.f32.mrf.mxu1  ;;  %v1544_v12 = vpop.f32.mrf.mxu0 }
 0x150   : > { %v1545_v13 = vadd.f32 %v1544_v12, %v1505_v6 }
 0x151   : > { %v1546_v14 = vpop.f32.mrf.mxu0  ;;  %v1584_v15 = vpop.f32.mrf.mxu1 }
 0x152   : > { %v1585_v16 = vadd.f32 %v1584_v15, %v1545_v13 }
 0x153   : > { %v1547_v17 = vpop.f32.mrf.mxu0  ;;  %v1586_v19 = vpop.f32.mrf.mxu1 }
 0x155   : > { %v1548_v20 = vpop.f32.mrf.mxu0  ;;  %v1587_v21 = vpop.f32.mrf.mxu1 }
 0x157   : > { %v1588_v22 = vpop.f32.mrf.mxu1  ;;  %v1624_v23 = vpop.f32.mrf.mxu0 }
 0x158   : > { %v1625_v24 = vadd.f32 %v1624_v23, %v1585_v16 }
 0x159   : > { %v1626_v25 = vpop.f32.mrf.mxu0  ;;  %v1664_v26 = vpop.f32.mrf.mxu1 }
 0x15a   : > { %v1665_v27 = vadd.f32 %v1664_v26, %v1625_v24 }
 0x15b   : > { %v1627_v28 = vpop.f32.mrf.mxu0  ;;  %v1666_v29 = vpop.f32.mrf.mxu1 }
 0x15d   : > { %v1628_v30 = vpop.f32.mrf.mxu0  ;;  %v1667_v31 = vpop.f32.mrf.mxu1 }
 0x15f   : > { %v1668_v32 = vpop.f32.mrf.mxu1  ;;  %v1704_v33 = vpop.f32.mrf.mxu0 }
 0x160   : > { %v1705_v34 = vadd.f32 %v1704_v33, %v1665_v27 }
 0x161   : > { %v1706_v35 = vpop.f32.mrf.mxu0  ;;  %v1744_v36 = vpop.f32.mrf.mxu1 }
 0x162   : > { %v1745_v37 = vadd.f32 %v1744_v36, %v1705_v34 }
 0x163   : > { %v1707_v38 = vpop.f32.mrf.mxu0  ;;  %v1746_v39 = vpop.f32.mrf.mxu1 }
 0x165   : > { %v1708_v40 = vpop.f32.mrf.mxu0  ;;  %v1747_v41 = vpop.f32.mrf.mxu1 }
 0x167   : > { %v1748_v42 = vpop.f32.mrf.mxu1  ;;  %v1784_v43 = vpop.f32.mrf.mxu0 }
 0x168   : > { %v1785_v44 = vadd.f32 %v1784_v43, %v1745_v37 }
 0x169   : > { %v1786_v45 = vpop.f32.mrf.mxu0  ;;  %v1824_v46 = vpop.f32.mrf.mxu1 }
 0x16a   : > { %v1825_v47 = vadd.f32 %v1824_v46, %v1785_v44 }
 0x16b   : > { %v1787_v48 = vpop.f32.mrf.mxu0  ;;  %v1826_v49 = vpop.f32.mrf.mxu1 }
 0x16d   : > { %v1788_v50 = vpop.f32.mrf.mxu0  ;;  %v1827_v51 = vpop.f32.mrf.mxu1 }
 0x16f   : > { %v1828_v52 = vpop.f32.mrf.mxu1  ;;  %v1864_v53 = vpop.f32.mrf.mxu0 }
 0x170   : > { %v1865_v20 = vadd.f32 %v1864_v53, %v1825_v47 }
 0x171   : > { %v1866_v54 = vpop.f32.mrf.mxu0  ;;  %v1904_v55 = vpop.f32.mrf.mxu1 }
 0x172   : > { %v1905_v25 = vadd.f32 %v1904_v55, %v1865_v20 }
 0x173   : > { %v1867_v56 = vpop.f32.mrf.mxu0  ;;  %v1906_v57 = vpop.f32.mrf.mxu1 }
 0x175   : > { %v1868_v58 = vpop.f32.mrf.mxu0  ;;  %v1907_v59 = vpop.f32.mrf.mxu1 }
 0x177   : > { %v1908_v60 = vpop.f32.mrf.mxu1  ;;  %v1944_v61 = vpop.f32.mrf.mxu0 }
 0x178   : > { %v1945_v28 = vadd.f32 %v1944_v61, %v1905_v25 }
 0x179   : > { %v1946_v62 = vpop.f32.mrf.mxu0  ;;  %v1984_v63 = vpop.f32.mrf.mxu1 }
 0x17a   : > { %v1985_v33 = vadd.f32 %v1984_v63, %v1945_v28 }
 0x17b   : > { %v1947_v0 = vpop.f32.mrf.mxu0  ;;  %v1986_v1 = vpop.f32.mrf.mxu1 }
 0x17d   : > { %v1948_v18 = vpop.f32.mrf.mxu0  ;;  %v1987_v2 = vpop.f32.mrf.mxu1 }
 0x17f   : > { %v1988_v3 = vpop.f32.mrf.mxu1  ;;  %v2024_v4 = vpop.f32.mrf.mxu0 }
 0x180   : > { %v2025_v36 = vadd.f32 %v2024_v4, %v1985_v33 }
 0x181   : > { %v2026_v5 = vpop.f32.mrf.mxu0  ;;  %v2064_v6 = vpop.f32.mrf.mxu1 }
 0x182   : > { %v2065_v41 = vadd.f32 %v2064_v6, %v2025_v36 }
 0x183   : > { %v2027_v7 = vpop.f32.mrf.mxu0  ;;  %v2066_v8 = vpop.f32.mrf.mxu1 }
 0x185   : > { %v2028_v9 = vpop.f32.mrf.mxu0  ;;  %v2067_v10 = vpop.f32.mrf.mxu1 }
 0x187   : > { %v2068_v11 = vpop.f32.mrf.mxu1  ;;  %v2104_v12 = vpop.f32.mrf.mxu0 }
 0x188   : > { %v2105_v44 = vadd.f32 %v2104_v12, %v2065_v41 }
 0x189   : > { %v2106_v13 = vpop.f32.mrf.mxu0  ;;  %v2144_v14 = vpop.f32.mrf.mxu1 }
 0x18a   : > { %v2145_v49 = vadd.f32 %v2144_v14, %v2105_v44 }
 0x18b   : > { %v2107_v15 = vpop.f32.mrf.mxu0  ;;  %v2146_v16 = vpop.f32.mrf.mxu1 }
 0x18d   : > { %v2108_v17 = vpop.f32.mrf.mxu0  ;;  %v2147_v19 = vpop.f32.mrf.mxu1 }
 0x18f   : > { %v2148_v21 = vpop.f32.mrf.mxu1  ;;  %v2184_v22 = vpop.f32.mrf.mxu0 }
 0x190   : > { %v2185_v52 = vadd.f32 %v2184_v22, %v2145_v49 }
 0x191   : > { %v2186_v23 = vpop.f32.mrf.mxu0  ;;  %v2224_v24 = vpop.f32.mrf.mxu1 }
 0x192   : > { %v2225_v57 = vadd.f32 %v2224_v24, %v2185_v52 }
 0x193   : > { %v2187_v26 = vpop.f32.mrf.mxu0  ;;  %v2226_v27 = vpop.f32.mrf.mxu1 }
 0x195   : > { %v2188_v29 = vpop.f32.mrf.mxu0  ;;  %v2227_v30 = vpop.f32.mrf.mxu1 }
 0x197   : > { %v2228_v31 = vpop.f32.mrf.mxu1  ;;  %v2264_v32 = vpop.f32.mrf.mxu0 }
 0x198   : > { %v2265_v60 = vadd.f32 %v2264_v32, %v2225_v57 }
 0x199   : > { %v2266_v34 = vpop.f32.mrf.mxu0  ;;  %v2304_v35 = vpop.f32.mrf.mxu1 }
 0x19a   : > { %v2305_v1 = vadd.f32 %v2304_v35, %v2265_v60 }
 0x19b   : > { %v2267_v37 = vpop.f32.mrf.mxu0  ;;  %v2306_v38 = vpop.f32.mrf.mxu1 }
 0x19d   : > { %v2268_v39 = vpop.f32.mrf.mxu0  ;;  %v2307_v40 = vpop.f32.mrf.mxu1 }
 0x19f   : > { %v2308_v42 = vpop.f32.mrf.mxu1  ;;  %v2344_v43 = vpop.f32.mrf.mxu0 }
 0x1a0   : > { %v2345_v3 = vadd.f32 %v2344_v43, %v2305_v1 }
 0x1a1   : > { %v2346_v45 = vpop.f32.mrf.mxu0  ;;  %v2384_v46 = vpop.f32.mrf.mxu1 }
 0x1a2   : > { %v2385_v8 = vadd.f32 %v2384_v46, %v2345_v3 }
 0x1a3   : > { %v2347_v47 = vpop.f32.mrf.mxu0  ;;  %v2386_v48 = vpop.f32.mrf.mxu1 }
 0x1a5   : > { %v2348_v50 = vpop.f32.mrf.mxu0  ;;  %v2387_v51 = vpop.f32.mrf.mxu1 }
 0x1a7   : > { %v2388_v53 = vpop.f32.mrf.mxu1  ;;  %v2424_v54 = vpop.f32.mrf.mxu0 }
 0x1a8   : > { %v2425_v11 = vadd.f32 %v2424_v54, %v2385_v8 }
 0x1a9   : > { %v2426_v55 = vpop.f32.mrf.mxu0  ;;  %v2464_v56 = vpop.f32.mrf.mxu1 }
 0x1aa   : > { %v2465_v16 = vadd.f32 %v2464_v56, %v2425_v11 }
 0x1ab   : > { %v2427_v58 = vpop.f32.mrf.mxu0  ;;  %v2466_v59 = vpop.f32.mrf.mxu1 }
 0x1ad   : > { %v2428_v61 = vpop.f32.mrf.mxu0  ;;  %v2467_v62 = vpop.f32.mrf.mxu1 }
 0x1af   : > { %v2468_v63 = vpop.f32.mrf.mxu1  ;;  %v2504_v0 = vpop.f32.mrf.mxu0 }
 0x1b0   : > { %v2505_v20 = vadd.f32 %v2504_v0, %v2465_v16 }
 0x1b1   : > { %v2506_v18 = vpop.f32.mrf.mxu0  ;;  %v2544_v2 = vpop.f32.mrf.mxu1 }
 0x1b2   : > { %v2545_v25 = vadd.f32 %v2544_v2, %v2505_v20 }
 0x1b3   : > { %v2507_v4 = vpop.f32.mrf.mxu0  ;;  %v2546_v5 = vpop.f32.mrf.mxu1 }
 0x1b5   : > { %v2508_v6 = vpop.f32.mrf.mxu0  ;;  %v2547_v7 = vpop.f32.mrf.mxu1 }
 0x1b7   : > { %v2548_v9 = vpop.f32.mrf.mxu1  ;;  %v2584_v10 = vpop.f32.mrf.mxu0 }
 0x1b8   : > { %v2585_v28 = vadd.f32 %v2584_v10, %v2545_v25  ;;  %v234_v10 = vld [vmem:[#allocation2] sm:$0x3] }
 0x1b9   : > { %v2586_v12 = vpop.f32.mrf.mxu0  ;;  %v2624_v13 = vpop.f32.mrf.mxu1 }
 0x1ba   : > { %v2625_v33 = vadd.f32 %v2624_v13, %v2585_v28 }
 0x1bb   : > { %v2587_v14 = vpop.f32.mrf.mxu0  ;;  %v2626_v15 = vpop.f32.mrf.mxu1 }
 0x1bd   : > { %v2588_v17 = vpop.f32.mrf.mxu0  ;;  %v2627_v19 = vpop.f32.mrf.mxu1 }
 0x1bf   : > { %v2628_v21 = vpop.f32.mrf.mxu1  ;;  %v2664_v22 = vpop.f32.mrf.mxu0 }
 0x1c0   : > { %v2665_v36 = vadd.f32 %v2664_v22, %v2625_v33 }
 0x1c1   : > { %v2666_v23 = vpop.f32.mrf.mxu0  ;;  %v2704_v24 = vpop.f32.mrf.mxu1 }
 0x1c2   : > { %v2705_v41 = vadd.f32 %v2704_v24, %v2665_v36 }
 0x1c3   : > { %v2667_v26 = vpop.f32.mrf.mxu0  ;;  %v2706_v27 = vpop.f32.mrf.mxu1 }
 0x1c5   : > { %v2668_v29 = vpop.f32.mrf.mxu0  ;;  %v2707_v30 = vpop.f32.mrf.mxu1 }
 0x1c7   : > { %v2708_v31 = vpop.f32.mrf.mxu1  ;;  %v2744_v32 = vpop.f32.mrf.mxu0 }
 0x1c8   : > { %v2745_v44 = vadd.f32 %v2744_v32, %v2705_v41 }
 0x1c9   : > { %v2746_v34 = vpop.f32.mrf.mxu0  ;;  %v2784_v35 = vpop.f32.mrf.mxu1 }
 0x1ca   : > { %v2785_v49 = vadd.f32 %v2784_v35, %v2745_v44 }
 0x1cb   : > { %v2747_v37 = vpop.f32.mrf.mxu0  ;;  %v2786_v38 = vpop.f32.mrf.mxu1 }
 0x1cd   : > { %v2748_v39 = vpop.f32.mrf.mxu0  ;;  %v2787_v40 = vpop.f32.mrf.mxu1 }
 0x1cf   : > { %v2788_v42 = vpop.f32.mrf.mxu1  ;;  %v2824_v43 = vpop.f32.mrf.mxu0 }
 0x1d0   : > { %v2825_v52 = vadd.f32 %v2824_v43, %v2785_v49 }
 0x1d1   : > { %v2826_v45 = vpop.f32.mrf.mxu0  ;;  %v2864_v46 = vpop.f32.mrf.mxu1 }
 0x1d2   : > { %v2865_v57 = vadd.f32 %v2864_v46, %v2825_v52 }
 0x1d3   : > { %v2827_v47 = vpop.f32.mrf.mxu0  ;;  %v2866_v48 = vpop.f32.mrf.mxu1 }
 0x1d5   : > { %v2828_v50 = vpop.f32.mrf.mxu0  ;;  %v2867_v51 = vpop.f32.mrf.mxu1 }
 0x1d7   : > { %v2868_v53 = vpop.f32.mrf.mxu1  ;;  %v2904_v54 = vpop.f32.mrf.mxu0 }
 0x1d8   : > { %v2905_v60 = vadd.f32 %v2904_v54, %v2865_v57 }
 0x1d9   : > { %v2906_v55 = vpop.f32.mrf.mxu0  ;;  %v2944_v56 = vpop.f32.mrf.mxu1 }
 0x1da   : > { %v2945_v1 = vadd.f32 %v2944_v56, %v2905_v60 }
 0x1db   : > { %v2907_v58 = vpop.f32.mrf.mxu0  ;;  %v2946_v59 = vpop.f32.mrf.mxu1 }
 0x1dd   : > { %v2908_v61 = vpop.f32.mrf.mxu0  ;;  %v2947_v62 = vpop.f32.mrf.mxu1 }
 0x1df   : > { %v2948_v63 = vpop.f32.mrf.mxu1  ;;  %v2984_v0 = vpop.f32.mrf.mxu0 }
 0x1e0   : > { %v2985_v3 = vadd.f32 %v2984_v0, %v2945_v1 }
 0x1e1   : > { %v2986_v18 = vpop.f32.mrf.mxu0  ;;  %v3024_v2 = vpop.f32.mrf.mxu1 }
 0x1e2   : > { %v3025_v8 = vadd.f32 %v3024_v2, %v2985_v3 }
 0x1e3   : > { %v2987_v4 = vpop.f32.mrf.mxu0  ;;  %v3026_v5 = vpop.f32.mrf.mxu1 }
 0x1e5   : > { %v2988_v6 = vpop.f32.mrf.mxu0  ;;  %v3027_v7 = vpop.f32.mrf.mxu1 }
 0x1e7   : > { %v3028_v9 = vpop.f32.mrf.mxu1  ;;  %v3064_v11 = vpop.f32.mrf.mxu0 }
 0x1e8   : > { %v3065_v12 = vadd.f32 %v3064_v11, %v3025_v8 }
 0x1e9   : > { %v3066_v13 = vpop.f32.mrf.mxu0  ;;  %3076 = sbr.rel (%p3276_p5) target bundleno = 503 (0x1f7), region = 52 }
 0x1ea   : > { %v3070_v14 = vadd.f32 %v3065_v12, %v234_v10 }
 0x1eb   : > { %v3067_v15 = vpop.f32.mrf.mxu0 }
 0x1ec   : > { %3072 = vst.msk [vmem:[#allocation2] sm:$0x3] %vm3071_vm1, %v3070_v14 }
 0x1ed   : > { %v3068_v16 = vpop.f32.mrf.mxu0 }
 0x1ee   : > { %v3277_v19 = vld [vmem:[#allocation8] ss:$0 sm:$0xff] }
 0x1f3   : > { %v3077_v17 = vld [vmem:[#allocation2] sm:$0x3] }
 0x1f4   : > { %v3085_v20 = vadd.f32 %v3277_v19, %v3077_v17 }
 0x1f6   : > { %3086 = vst.msk [vmem:[#allocation9] sm:$0x3] %vm3071_vm1, %v3085_v20 }
 0x1f7 PF: > { %p3314_p1 = scmp.eq.s32.totalorder %s3652_s16, 7  ;;  %s3612_s21 = smov [#allocation9]  }
 0x1f8   : > { %s3094_s22 = sshll.u32 %s3612_s21, 4  ;;  %s3095_s22 = int_to_ptr.vmem [resolvable:$true] %s3094_s22 }
 0x1f9   : > { %s3535_s26 = scalar_lea.vmem %s3095_s22, 32  ;;  %p3542_p3 = scmp.lt.s32.totalorder %s3095_s22, %s3095_s22 }
 0x1fa   : > { %p3536_p6 = scmp.ne.s32.totalorder %s3095_s22, %s3535_s26  ;;  %p3543_p11 = scmp.lt.s32.totalorder %s3535_s26, %s3535_s26 }
 0x1fc   : > { %p3537_p9 = pnand %p3536_p6, %p3314_p1  ;;  %p3544_p4 = por %p3543_p11, %p3542_p3 }
 0x1fe   : > { %p3538_p10 = pneg %p3537_p9 }
 0x200   : > { %p3545_p8 = pnand %p3544_p4, %p3538_p10 }
 0x202   : > { %3548 = shalt.err (!%p3545_p8)
}
 0x203   : > { %3297 = dma.vmem_to_hbm [thread:$0]  (%p3314_p1), %s3095_s22, 32, %s3941_s3, [#allocation5]  }
 0x204   : > { %3588 = dma.done.wait (%p3314_p1), [#allocation5], 32  }
 0x205   : > { %3590 = vsyncadd (%p3314_p1), [#allocation5], 4294967264 }
 0x206 PF: > { %p17_p12 = scmp.ge.s32.totalorder %s3655_s17, 10   ;;  %s3954_s12 = smov %s3597_s13 }
 0x207   : > { %s3955_s13 = smov %s3601_s14  ;;  %s3956_s14 = smov %s3665_s20 }
 0x208   : > { %s3957_s15 = smov %s3655_s17  ;;  %19 = sbr.rel (!%p17_p12) target bundleno = 6 (0x6), region = 94 }
 0x20d   :  { %3107 = vsyncpa [#allocation4], 1 }
 0x20e   :  { %3109 = vsyncpa [#allocation4 + $0x1], 1 }
 0x20f   :  { %3110 = vsyncpa [#allocation7], 1 }
 0x210   :  { %3112 = vsyncpa [#allocation7 + $0x1], 1 }
 0x211   :  { %3113 = vsyncpa [#allocation5], 1 }
 0x212   :  { %3115 = vsyncpa [#allocation5 + $0x1], 1 }

</bundles_post_ra>
